<compile_context>
chip_gen: v7x
topology: tpu7x:2x2x1
jax: 0.10.0
libtpu: 0.0.40
codegen_flags: <defaults>
</compile_context>

<pallas_src>
from functools import partial

import jax
import jax.numpy as jnp
from jax.experimental import pallas as pl
from jax.experimental.pallas import tpu as pltpu

VOCAB = 64   # number of nodes in the graph
D = 32       # embedding dimension
B = 8        # batch size
NEG = 5      # self.negative (default in Node2Emb.__init__)


def _node2emb_kernel(idx_ref, table_ref, loss_ref, *, batch, negative, vocab):
    """Fused one-hot embedding gather + NCE loss; all intermediates stay in vregs.

    idx_ref (int32, [(2+NEG)*B, 1]) row layout:
      rows 0..B-1        : input_labels[b]
      rows B..2B-1       : out_labels[b]          (positive context)
      rows (2+j)*B + b   : noise_idx[b, j]        (negatives, column-major j*B+b order)
    """
    n_gather = (2 + negative) * batch      # rows gathered from the table
    n_pairs = (1 + negative) * batch       # positive + negative score pairs

    # ---- vectorized gather: one-hot mask + one tiny MXU matmul (bounds-safe) ----
    vocab_iota = jax.lax.broadcasted_iota(jnp.int32, (n_gather, vocab), 1)
    onehot = jnp.where(vocab_iota == idx_ref[...],
                       jnp.float32(1.0), jnp.float32(0.0))            # [n_gather, VOCAB]
    gathered = jnp.dot(onehot, table_ref[...],
                       preferred_element_type=jnp.float32)            # [n_gather, D]

    w_inp = gathered[:batch, :]            # [B, D]        emb[input_labels]
    w_ctxneg = gathered[batch:, :]         # [n_pairs, D]  emb[out_labels] ++ emb[noise]

    # ---- all (1+NEG)*B dot products in one MXU matmul: S[r, c] = <ctxneg[r], inp[c]> ----
    scores = jax.lax.dot_general(
        w_ctxneg, w_inp, (((1,), (1,)), ((), ())),
        preferred_element_type=jnp.float32)                           # [n_pairs, B]

    row = jax.lax.broadcasted_iota(jnp.int32, (n_pairs, batch), 0)
    col = jax.lax.broadcasted_iota(jnp.int32, (n_pairs, batch), 1)
    pick = col == (row % batch)            # row k*B + b pairs with inp[b]
    # positives (first B rows) keep +score; negatives carry the torch `.neg()`
    z = jnp.where(row < batch, scores, -scores)
    # stable log(sigmoid(z)) — one EUP exp + log1p pass over the whole tile
    log_sig = jnp.minimum(z, 0.0) - jnp.log1p(jnp.exp(-jnp.abs(z)))
    total = jnp.sum(jnp.where(pick, log_sig, jnp.float32(0.0)), keepdims=True)  # (1, 1)
    loss_ref[...] = -total / jnp.float32(batch)


def node2emb_loss(emb_table, input_labels, out_labels, noise_idx):
    """Node2Emb.forward. noise_idx plays the role of negative_sampling_fn's draw,
    already resized to (B, NEG)."""
    (batch,) = input_labels.shape
    negative = noise_idx.shape[1]
    vocab, _ = emb_table.shape

    # Column-major noise layout (j*B + b) so gathered row (1+j)*B + b pairs with inp[b].
    noise_cm = noise_idx.T.reshape(-1)
    idx = jnp.concatenate([
        input_labels.astype(jnp.int32),
        out_labels.astype(jnp.int32),
        noise_cm.astype(jnp.int32),
    ]).reshape(-1, 1)                                                  # [(2+NEG)*B, 1]

    loss = pl.pallas_call(
        partial(_node2emb_kernel, batch=batch, negative=negative, vocab=vocab),
        out_shape=jax.ShapeDtypeStruct((1, 1), jnp.float32),
        in_specs=[
            pl.BlockSpec(memory_space=pltpu.MemorySpace.VMEM),   # all indices, dense int32
            pl.BlockSpec(memory_space=pltpu.MemorySpace.VMEM),   # table: one 8 KiB DMA
        ],
        # (1,1) VMEM output -> single masked store; accepted for a scalar result.
        out_specs=pl.BlockSpec(memory_space=pltpu.MemorySpace.VMEM),
    )(idx, emb_table)
    return loss.reshape(())


def _reference_loss(emb_table, input_labels, out_labels, noise_idx):
    """Pure-JAX reference mirroring the PyTorch code (exact f32 elementwise math)."""
    inp = emb_table[input_labels]                                     # [B, D]
    ctx = emb_table[out_labels]                                       # [B, D]
    log_target = jax.nn.log_sigmoid(jnp.sum(inp * ctx, axis=1))       # [B]
    noise = -emb_table[noise_idx]                                     # [B, NEG, D]
    scores = jnp.sum(noise * inp[:, None, :], axis=-1)                # bmm(noise, inp[:,:,None])
    sum_log_sampled = jnp.sum(jax.nn.log_sigmoid(scores), axis=1)     # [B]
    loss = log_target + sum_log_sampled
    return -jnp.sum(loss) / input_labels.shape[0]


if __name__ == "__main__":
    key = jax.random.PRNGKey(0)
    k_emb, k_in, k_out, k_neg = jax.random.split(key, 4)

    # nn.Embedding default init ~ N(0, 1); node_embedding and context_embedding
    # share the same weight in the module, so a single table is used.
    emb_table = jax.random.normal(k_emb, (VOCAB, D), dtype=jnp.float32)

    input_labels = jax.random.randint(k_in, (B,), 0, VOCAB, dtype=jnp.int32)
    out_labels = jax.random.randint(k_out, (B,), 0, VOCAB, dtype=jnp.int32)
    # Deterministic stand-in for negative_sampling_fn(batch*negative).resize((B, NEG))
    noise_idx = jax.random.randint(k_neg, (B, NEG), 0, VOCAB, dtype=jnp.int32)

    loss = node2emb_loss(emb_table, input_labels, out_labels, noise_idx)
    jax.block_until_ready(loss)

    ref = _reference_loss(emb_table, input_labels, out_labels, noise_idx)
    # Tolerance covers MXU f32 contraction modes (multi-pass bf16 emulation) used by the
    # in-kernel matmuls; the math itself is identical to the reference.
    assert jnp.allclose(loss, ref, rtol=1e-2, atol=1e-2), (loss, ref)

    print("KERNEL_OK")
</pallas_src>

<mosaic_0001>
module attributes {stable_mosaic.version = 11 : i64} {
  func.func @_node2emb_kernel(%arg0: memref<56x1xi32, #tpu.memory_space<vmem>>, %arg1: memref<64x32xf32, #tpu.memory_space<vmem>>, %arg2: memref<1x1xf32, #tpu.memory_space<vmem>>) attributes {dimension_semantics = [], scalar_prefetch = 0 : i64, scratch_operands = 0 : i64, tpu.core_type = #tpu.core_type<tc>} {
    %0 = tpu.iota {dimensions = array<i32: 1>} : vector<56x64xi32>
    %c0 = arith.constant 0 : index
    %c0_0 = arith.constant 0 : index
    %1 = vector.load %arg0[%c0, %c0_0] : memref<56x1xi32, #tpu.memory_space<vmem>>, vector<56x1xi32>
    %2 = vector.broadcast %1 : vector<56x1xi32> to vector<56x64xi32>
    %3 = arith.cmpi eq, %0, %2 : vector<56x64xi32>
    %cst = arith.constant 1.000000e+00 : f32
    %cst_1 = arith.constant 0.000000e+00 : f32
    %4 = vector.broadcast %cst : f32 to vector<56x64xf32>
    %5 = vector.broadcast %cst_1 : f32 to vector<56x64xf32>
    %6 = arith.select %3, %4, %5 : vector<56x64xi1>, vector<56x64xf32>
    %c0_2 = arith.constant 0 : index
    %c0_3 = arith.constant 0 : index
    %7 = vector.load %arg1[%c0_2, %c0_3] : memref<64x32xf32, #tpu.memory_space<vmem>>, vector<64x32xf32>
    %cst_4 = arith.constant dense<0.000000e+00> : vector<56x32xf32>
    %8 = tpu.matmul %6, %7, %cst_4 {dimension_numbers = #tpu.dot_dimension_numbers<[1], [0], [0], [1], [0, 0, 1, 1], [], []>} : vector<56x64xf32>, vector<64x32xf32>, vector<56x32xf32> -> vector<56x32xf32>
    %9 = vector.extract_strided_slice %8 {offsets = [0, 0], sizes = [8, 32], strides = [1, 1]} : vector<56x32xf32> to vector<8x32xf32>
    %10 = vector.extract_strided_slice %8 {offsets = [8, 0], sizes = [48, 32], strides = [1, 1]} : vector<56x32xf32> to vector<48x32xf32>
    %cst_5 = arith.constant dense<0.000000e+00> : vector<48x8xf32>
    %11 = tpu.matmul %10, %9, %cst_5 {dimension_numbers = #tpu.dot_dimension_numbers<[1], [1], [0], [0], [0, 0, 1, 0], [], []>} : vector<48x32xf32>, vector<8x32xf32>, vector<48x8xf32> -> vector<48x8xf32>
    %12 = tpu.iota {dimensions = array<i32: 0>} : vector<48x8xi32>
    %13 = tpu.iota {dimensions = array<i32: 1>} : vector<48x8xi32>
    %c8_i32 = arith.constant 8 : i32
    %c0_i32 = arith.constant 0 : i32
    %14 = arith.cmpi eq, %c8_i32, %c0_i32 : i32
    %c1_i32 = arith.constant 1 : i32
    %15 = arith.select %14, %c1_i32, %c8_i32 : i32
    %16 = vector.broadcast %15 : i32 to vector<48x8xi32>
    %17 = arith.remsi %12, %16 : vector<48x8xi32>
    %c0_i32_6 = arith.constant 0 : i32
    %18 = vector.broadcast %c0_i32_6 : i32 to vector<48x8xi32>
    %19 = arith.cmpi ne, %17, %18 : vector<48x8xi32>
    %c0_i32_7 = arith.constant 0 : i32
    %20 = vector.broadcast %c0_i32_7 : i32 to vector<48x8xi32>
    %21 = arith.cmpi slt, %17, %20 : vector<48x8xi32>
    %c0_i32_8 = arith.constant 0 : i32
    %22 = arith.cmpi slt, %15, %c0_i32_8 : i32
    %23 = vector.broadcast %22 : i1 to vector<48x8xi1>
    %24 = vector.broadcast %23 : vector<48x8xi1> to vector<48x8xi1>
    %25 = arith.xori %21, %24 : vector<48x8xi1>
    %26 = arith.andi %25, %19 : vector<48x8xi1>
    %27 = vector.broadcast %15 : i32 to vector<48x8xi32>
    %28 = arith.addi %17, %27 : vector<48x8xi32>
    %29 = arith.select %26, %28, %17 : vector<48x8xi1>, vector<48x8xi32>
    %30 = arith.cmpi eq, %13, %29 : vector<48x8xi32>
    %c8_i32_9 = arith.constant 8 : i32
    %31 = vector.broadcast %c8_i32_9 : i32 to vector<48x8xi32>
    %32 = arith.cmpi slt, %12, %31 : vector<48x8xi32>
    %cst_10 = arith.constant 0.000000e+00 : f32
    %33 = vector.broadcast %cst_10 : f32 to vector<48x8xf32>
    %34 = arith.subf %33, %11 : vector<48x8xf32>
    %35 = arith.select %32, %11, %34 : vector<48x8xi1>, vector<48x8xf32>
    %cst_11 = arith.constant 0.000000e+00 : f32
    %36 = vector.broadcast %cst_11 : f32 to vector<48x8xf32>
    %37 = arith.minimumf %35, %36 : vector<48x8xf32>
    %38 = math.absf %35 : vector<48x8xf32>
    %cst_12 = arith.constant 0.000000e+00 : f32
    %39 = vector.broadcast %cst_12 : f32 to vector<48x8xf32>
    %40 = arith.subf %39, %38 : vector<48x8xf32>
    %41 = math.exp %40 : vector<48x8xf32>
    %42 = math.log1p %41 : vector<48x8xf32>
    %43 = arith.subf %37, %42 : vector<48x8xf32>
    %cst_13 = arith.constant 0.000000e+00 : f32
    %44 = vector.broadcast %cst_13 : f32 to vector<48x8xf32>
    %45 = arith.select %30, %43, %44 : vector<48x8xi1>, vector<48x8xf32>
    %46 = vector.shape_cast %45 : vector<48x8xf32> to vector<1x48x8xf32>
    %cst_14 = arith.constant dense<0.000000e+00> : vector<1xf32>
    %47 = vector.multi_reduction <add>, %46, %cst_14 [1, 2] : vector<1x48x8xf32> to vector<1xf32>
    %48 = vector.shape_cast %47 : vector<1xf32> to vector<1x1x1xf32>
    %49 = vector.extract %48[0, 0, 0] : f32 from vector<1x1x1xf32>
    %50 = vector.broadcast %49 : f32 to vector<1x1xf32>
    %cst_15 = arith.constant 0.000000e+00 : f32
    %51 = vector.broadcast %cst_15 : f32 to vector<1x1xf32>
    %52 = arith.subf %51, %50 : vector<1x1xf32>
    %cst_16 = arith.constant 8.000000e+00 : f32
    %53 = vector.broadcast %cst_16 : f32 to vector<1x1xf32>
    %54 = arith.divf %52, %53 : vector<1x1xf32>
    %c0_17 = arith.constant 0 : index
    %c0_18 = arith.constant 0 : index
    %55 = vector.load %arg2[%c0_17, %c0_18] : memref<1x1xf32, #tpu.memory_space<vmem>>, vector<1x1xf32>
    tpu.vector_store %arg2[%c0_17, %c0_18], %54 {strides = array<i32>} : memref<1x1xf32, #tpu.memory_space<vmem>>, vector<1x1xf32>,
    return
  }
}

</mosaic_0001>

<bundles_post_ra>
// kernel: tpu_custom_call.1
= control target key start
LH: loop header
LB: loop body
LE: loop exit
PB: predicated region body
PF: predicated region fallthrough
CT: control target
= control target key end

     0   :  { %v704_v2 = vmov 0   ;;  %v705_v7 = vmov 0.0|0.0   ;;  %vm706_vm0 = vmmov 0   ;;  %v707_v11 = vmov 0.0   ;;  %s931_s0 = inlined_call_operand.vmem [shape: s32[56,1], index: 0, kind: input, shape index: {}]   ;;  %s932_s1 = inlined_call_operand.vmem [shape: f32[64,32], index: 1, kind: input, shape index: {}]   ;;  %s933_s2 = inlined_call_operand.hbm [shape: f32[1,1], index: 2, kind: output, shape index: {}]  }
   0x1   :  { %v16_v0 = vld [vmem:[%s931_s0 + $0x10] sm:$0xff]  ;;  %v14_v1 = vld [vmem:[%s931_s0] sm:$0xff]  ;;  %655 = vset.pattern.permute.xlu1 %v704_v2  ;;  %654 = vset.pattern.permute.xlu0 %v704_v2  ;;  %v17_v3 = vld [vmem:[%s931_s0 + $0x18] sm:$0xff] }
   0x2   :  { %28 = vperm.xlu1 %655, %v16_v0   ;;  %22 = vperm.xlu0 %654, %v14_v1   ;;  %v56_v4 = vld [vmem:[%s932_s1] sm:$0xff]  ;;  %v57_v5 = vld [vmem:[%s932_s1 + $0x8] sm:$0xff]  ;;  %v58_v9 = vld [vmem:[%s932_s1 + $0x10] sm:$0xff] }
   0x3   :  { %v15_v6 = vld [vmem:[%s931_s0 + $0x8] sm:$0xff]  ;;  %627 = vmatprep.subr.bf16.mxu0 %v705_v7  ;;  %v628_v8 = vpack.c.bf16 %v57_v5, %v56_v4  ;;  %v59_v10 = vld [vmem:[%s932_s1 + $0x18] sm:$0xff]  ;;  %639 = vmatprep.subr.bf16.mxu1 %v705_v7 }
   0x4   :  { %595 = vmatprep.mubr.msk.f32.mxu0 %vm706_vm0, %v707_v11  ;;  %610 = vmatprep.mubr.msk.f32.mxu1 %vm706_vm0, %v707_v11  ;;  %v631_v12 = vpack.c.bf16 %v59_v10, %v58_v9 }
   0x5   :  { %629 = vmatpush3.bf16.msra.mxu0 %v628_v8  ;;  %643 = vmatpush3.bf16.msra.mxu1 %v628_v8 }
   0x6   :  { %7 = vsyncpa [#allocation3], 0  ;;  %31 = vperm.xlu1 %655, %v17_v3   ;;  %25 = vperm.xlu0 %654, %v15_v6   ;;  %v60_v13 = vld [vmem:[%s932_s1 + $0x20] sm:$0xff]  ;;  %v61_v14 = vld [vmem:[%s932_s1 + $0x28] sm:$0xff]  ;;  %v12_v22 = vlaneseq  ;;  %vm64_vm1 = vcmask 523264   ;;  %vm186_vm9 = vcmask 261120  }
   0x7   :  { %v19_v15 = vld [vmem:[%s931_s0 + $0x28] sm:$0xff]  ;;  %v18_v16 = vld [vmem:[%s931_s0 + $0x20] sm:$0xff]  ;;  %630 = vmatprep.subr.bf16.mxu0 %v705_v7  ;;  %640 = vmatprep.subr.bf16.mxu1 %v705_v7  ;;  %v634_v17 = vpack.c.bf16 %v61_v14, %v60_v13  ;;  %v62_v18 = vld [vmem:[%s932_s1 + $0x30] sm:$0xff]  ;;  %vm502_vm14 = vcmask 64512  }
   0x8   :  { %v63_v19 = vld [vmem:[%s932_s1 + $0x38] sm:$0xff]  ;;  %v20_v20 = vld [vmem:[%s931_s0 + $0x30] sm:$0xff]  ;;  %v774_v23 = vand.u32 127, %v12_v22  ;;  %s708_s1 = smov [#allocation2]  }
   0x9   :  { %632 = vmatpush3.bf16.msra.mxu0 %v631_v12  ;;  %644 = vmatpush3.bf16.msra.mxu1 %v631_v12  ;;  %v637_v21 = vpack.c.bf16 %v63_v19, %v62_v18  ;;  %s535_s11 = sshll.u32 %s708_s1, 4  ;;  %s536_s11 = int_to_ptr.vmem [resolvable:$true] %s535_s11 }
   0xa   :  { %37 = vperm.xlu1 %655, %v19_v15   ;;  %34 = vperm.xlu0 %654, %v18_v16   ;;  %v842_v15 = vshrl.u32 %v12_v22, 7  ;;  %s680_s12 = scalar_lea.vmem %s536_s11, 16  ;;  %s684_s13 = scalar_lea.vmem %s536_s11, 32 }
   0xb   :  { %633 = vmatprep.subr.bf16.mxu0 %v705_v7  ;;  %641 = vmatprep.subr.bf16.mxu1 %v705_v7  ;;  %p681_p0 = scmp.ne.s32.totalorder %s536_s11, %s680_s12  ;;  %p685_p1 = scmp.lt.s32.totalorder %s536_s11, %s536_s11 }
   0xc   :  { %v314_v22 = vand.u32 7, %v842_v15  ;;  %p686_p2 = scmp.lt.s32.totalorder %s684_s13, %s680_s12 }
   0xd   :  { %635 = vmatpush3.bf16.msra.mxu0 %v634_v17  ;;  %645 = vmatpush3.bf16.msra.mxu1 %v634_v17 }
   0xe   :  { %40 = vperm.xlu0 %654, %v20_v20   ;;  %636 = vmatprep.subr.bf16.mxu0 %v705_v7  ;;  %vm855_vm11 = vcmp.eq.s32.totalorder %v774_v23, %v314_v22  ;;  %p687_p3 = por %p686_p2, %p685_p1 }
   0xf   :  { %642 = vmatprep.subr.bf16.mxu1 %v705_v7 }
  0x10   :  { %p688_p4 = pnand %p687_p3, %p681_p0 }
  0x11   :  { %638 = vmatpush3.bf16.msra.mxu0 %v637_v21  ;;  %646 = vmatpush3.bf16.msra.mxu1 %v637_v21 }
  0x81   :  { %v29_v24 = vpop.permute.xlu1 %28  ;;  %v23_v25 = vpop.permute.xlu0 %22 }
  0x82   :  { %vm42_vm2 = vcmp.eq.s32.totalorder %v774_v23, %v23_v25  ;;  %vm44_vm3 = vcmp.eq.s32.totalorder %v774_v23, %v29_v24  ;;  %v305_v24 = vadd.s32 8, %v842_v15 }
  0x83   :  { %v49_v26 = vsel %vm42_vm2, 1.0, %v707_v11  ;;  %v51_v30 = vsel %vm44_vm3, 1.0, %v707_v11 }
  0x84   :  { %596 = vmatmul.mubr.msk.f32.vlgmr.msra.gmra.mrb[0].mxu0 %vm64_vm1, %v49_v26 }
  0x85   :  { %v32_v27 = vpop.permute.xlu1 %31  ;;  %v26_v28 = vpop.permute.xlu0 %25  ;;  %598 = vmatprep.mubr.msk.f32.mxu0 %vm706_vm0, %v707_v11 }
  0x86   :  { %vm43_vm4 = vcmp.eq.s32.totalorder %v774_v23, %v26_v28  ;;  %vm45_vm6 = vcmp.eq.s32.totalorder %v774_v23, %v32_v27  ;;  %v321_v27 = vand.u32 7, %v305_v24 }
  0x87   :  { %v50_v29 = vsel %vm43_vm4, 1.0, %v707_v11  ;;  %v52_v35 = vsel %vm45_vm6, 1.0, %v707_v11 }
  0x88   :  { %599 = vmatmul.mubr.msk.f32.gmra.mrb[2].mxu0 %vm64_vm1, %v50_v29  ;;  %vm850_vm10 = vcmp.eq.s32.totalorder %v774_v23, %v321_v27 }
  0x89   :  { %v38_v31 = vpop.permute.xlu1 %37  ;;  %v35_v32 = vpop.permute.xlu0 %34  ;;  %601 = vmatprep.mubr.msk.f32.mxu0 %vm706_vm0, %v707_v11 }
  0x8a   :  { %vm47_vm5 = vcmp.eq.s32.totalorder %v774_v23, %v38_v31  ;;  %vm46_vm8 = vcmp.eq.s32.totalorder %v774_v23, %v35_v32 }
  0x8b   :  { %v54_v33 = vsel %vm47_vm5, 1.0, %v707_v11  ;;  %v53_v37 = vsel %vm46_vm8, 1.0, %v707_v11 }
  0x8c   :  { %602 = vmatmul.mubr.msk.f32.gmra.mrb[4].mxu0 %vm64_vm1, %v51_v30  ;;  %611 = vmatmul.mubr.msk.f32.vlgmr.msra.gmra.mrb[0].mxu1 %vm64_vm1, %v54_v33 }
  0x8d   :  { %v41_v34 = vpop.permute.xlu0 %40  ;;  %604 = vmatprep.mubr.msk.f32.mxu0 %vm706_vm0, %v707_v11  ;;  %613 = vmatprep.mubr.msk.f32.mxu1 %vm706_vm0, %v707_v11 }
  0x8e   :  { %vm48_vm7 = vcmp.eq.s32.totalorder %v774_v23, %v41_v34 }
  0x8f   :  { %v55_v36 = vsel %vm48_vm7, 1.0, %v707_v11  ;;  %vm527_vm7 = vcmask 0  }
  0x90   :  { %605 = vmatmul.mubr.msk.f32.gmra.mrb[6].mxu0 %vm64_vm1, %v52_v35  ;;  %614 = vmatmul.mubr.msk.f32.gmra.mrb[2].mxu1 %vm64_vm1, %v55_v36 }
  0x91   :  { %607 = vmatprep.mubr.msk.f32.mxu0 %vm706_vm0, %v707_v11 }
  0x94   :  { %608 = vmatmul.mubr.msk.f32.gmra.mrb[8].mxu0 %vm64_vm1, %v53_v37 }
 0x157   :  { %v152_v38 = vpop.f32.mrb[0].mxu0 }
 0x158   :  { %v597_v39 = vpop.f32.mrb[1].mxu0  ;;  %616 = vmatprep.subr.msk.mxu1 %vm186_vm9, %v152_v38 }
 0x159   :  { %617 = vmatpush3.xpose.msk.msra.mxu1 %vm186_vm9, %v152_v38  ;;  %v307_v39 = vadd.s32 24, %v842_v15 }
 0x15b   :  { %v157_v40 = vpop.f32.mrb[2].mxu0 }
 0x15c   :  { %v600_v41 = vpop.f32.mrb[3].mxu0  ;;  %618 = vmatprep.mubr.msk.f32.mxu1 %vm186_vm9, %v157_v40  ;;  %v306_v40 = vadd.s32 16, %v842_v15 }
 0x15f   :  { %v162_v42 = vpop.f32.mrb[4].mxu0  ;;  %v177_v43 = vpop.f32.mrb[0].mxu1 }
 0x160   :  { %v603_v44 = vpop.f32.mrb[5].mxu0  ;;  %v612_v45 = vpop.f32.mrb[1].mxu1  ;;  %619 = vmatmul.mubr.msk.f32.vlgmr.msra.gmra.mrb[4].mxu1 %vm186_vm9, %v162_v42 }
 0x163   :  { %v167_v46 = vpop.f32.mrb[6].mxu0  ;;  %v182_v47 = vpop.f32.mrb[2].mxu1 }
 0x164   :  { %v606_v48 = vpop.f32.mrb[7].mxu0  ;;  %v615_v49 = vpop.f32.mrb[3].mxu1  ;;  %621 = vmatprep.mubr.msk.f32.mxu1 %vm186_vm9, %v167_v46 }
 0x167   :  { %v172_v50 = vpop.f32.mrb[8].mxu0 }
 0x168   :  { %v609_v51 = vpop.f32.mrb[9].mxu0  ;;  %622 = vmatmul.mubr.msk.f32.gmra.mrb[6].mxu1 %vm186_vm9, %v172_v50 }
 0x169   :  { %624 = vmatprep.mubr.msk.f32.mxu1 %vm186_vm9, %v177_v43 }
 0x16c   :  { %625 = vmatmul.mubr.msk.f32.gmra.mrb[8].mxu1 %vm186_vm9, %v182_v47 }
 0x233   :  { %v815_v52 = vpop.f32.mrb[4].mxu1 }
 0x234   :  { %v395_v53 = vsub.f32 0.0, %v815_v52  ;;  %v818_v54 = vpop.f32.mrb[5].mxu1 }
 0x235   :  { %v412_v55 = vand.u32 2147483647, %v818_v54  ;;  %v406_v43 = vmin.f32 %v818_v54, 0.0 }
 0x236   :  { %v413_v56 = vand.u32 2147483647, %v395_v53  ;;  %v407_v42 = vmin.f32 %v395_v53, 0.0 }
 0x237   :  { %v418_v57 = vsub.f32 0.0, %v412_v55 }
 0x238   :  { %v419_v58 = vsub.f32 0.0, %v413_v56 }
 0x239   :  { %v424_v59 = vmul.f32 1.442695, %v418_v57 }
 0x23a   :  { %v426_v60 = vmul.f32 1.442695, %v419_v58  ;;  %v335_v58 = vand.u32 7, %v307_v39 }
 0x23b   :  { %656 = vpow2.f32 %v424_v59  ;;  %v821_v61 = vpop.f32.mrb[6].mxu1  ;;  %v328_v59 = vand.u32 7, %v306_v40 }
 0x23c   :  { %658 = vpow2.f32 %v426_v60  ;;  %v397_v62 = vsub.f32 0.0, %v821_v61  ;;  %v824_v63 = vpop.f32.mrb[7].mxu1  ;;  %vm879_vm15 = vcmp.eq.s32.totalorder %v774_v23, %v335_v58 }
 0x23d   :  { %v396_v0 = vsub.f32 0.0, %v824_v63  ;;  %vm884_vm0 = vcmp.eq.s32.totalorder %v774_v23, %v328_v59 }
 0x23e   :  { %v415_v1 = vand.u32 2147483647, %v397_v62  ;;  %v409_v27 = vmin.f32 %v397_v62, 0.0 }
 0x23f   :  { %v414_v2 = vand.u32 2147483647, %v396_v0  ;;  %v831_v3 = vpop.f32.mrb[8].mxu1 }
 0x240   :  { %v421_v4 = vsub.f32 0.0, %v415_v1  ;;  %v399_v5 = vsub.f32 0.0, %v831_v3  ;;  %v834_v6 = vpop.f32.mrb[9].mxu1 }
 0x241   :  { %v420_v7 = vsub.f32 0.0, %v414_v2  ;;  %v398_v8 = vsub.f32 0.0, %v834_v6  ;;  %v309_v2 = vadd.s32 40, %v842_v15 }
 0x242   :  { %v430_v9 = vmul.f32 1.442695, %v421_v4  ;;  %v417_v10 = vand.u32 2147483647, %v399_v5  ;;  %v411_v62 = vmin.f32 %v399_v5, 0.0 }
 0x243   :  { %v428_v11 = vmul.f32 1.442695, %v420_v7  ;;  %v416_v12 = vand.u32 2147483647, %v398_v8 }
 0x244   :  { %660 = vpow2.f32 %v430_v9  ;;  %v423_v13 = vsub.f32 0.0, %v417_v10 }
 0x245   :  { %v657_v14 = vpop.eup %656  ;;  %662 = vpow2.f32 %v428_v11  ;;  %v422_v16 = vsub.f32 0.0, %v416_v12 }
 0x246   :  { %v659_v17 = vpop.eup %658  ;;  %v436_v18 = vadd.f32 1.0, %v657_v14  ;;  %v434_v19 = vmul.f32 1.442695, %v423_v13  ;;  %v439_v25 = vmul.f32 -0.5, %v657_v14  ;;  %v442_v33 = vand.u32 2147483647, %v657_v14 }
 0x247   :  { %v445_v20 = vadd.f32 1.0, %v659_v17  ;;  %v432_v21 = vmul.f32 1.442695, %v422_v16  ;;  %v448_v26 = vmul.f32 -0.5, %v659_v17  ;;  %v451_v36 = vand.u32 2147483647, %v659_v17 }
 0x248   :  { %664 = vlog2.f32 %v436_v18  ;;  %v440_v30 = vadd.f32 1.0, %v439_v25  ;;  %vm443_vm12 = vcmp.lt.f32.partialorder %v442_v33, 0.0004427343  ;;  %v308_v25 = vadd.s32 32, %v842_v15 }
 0x249   :  { %666 = vlog2.f32 %v445_v20  ;;  %v449_v32 = vadd.f32 1.0, %v448_v26  ;;  %vm452_vm13 = vcmp.lt.f32.partialorder %v451_v36, 0.0004427343  ;;  %v349_v26 = vand.u32 7, %v309_v2 }
 0x24a   :  { %668 = vpow2.f32 %v434_v19  ;;  %v441_v45 = vmul.f32 %v657_v14, %v440_v30  ;;  %v342_v38 = vand.u32 7, %v308_v25 }
 0x24b   :  { %670 = vpow2.f32 %v432_v21  ;;  %v450_v48 = vmul.f32 %v659_v17, %v449_v32  ;;  %v408_v32 = vmin.f32 %v396_v0, 0.0  ;;  %vm900_vm3 = vcmp.eq.s32.totalorder %v774_v23, %v349_v26 }
 0x24c   :  { %vm386_vm6 = vcmp.eq.s32.totalorder %v774_v23, %v342_v38 }
 0x24e   :  { %v661_v28 = vpop.eup %660 }
 0x24f   :  { %v846_v29 = vpop.eup %662  ;;  %v463_v31 = vadd.f32 1.0, %v661_v28  ;;  %v466_v49 = vmul.f32 -0.5, %v661_v28  ;;  %v469_v9 = vand.u32 2147483647, %v661_v28 }
 0x250   :  { %v454_v34 = vadd.f32 1.0, %v846_v29  ;;  %v457_v52 = vmul.f32 -0.5, %v846_v29  ;;  %v460_v12 = vand.u32 2147483647, %v846_v29 }
 0x251   :  { %672 = vlog2.f32 %v463_v31  ;;  %v467_v1 = vadd.f32 1.0, %v466_v49  ;;  %vm470_vm1 = vcmp.lt.f32.partialorder %v469_v9, 0.0004427343 }
 0x252   :  { %v665_v37 = vpop.eup %664  ;;  %674 = vlog2.f32 %v454_v34  ;;  %v458_v10 = vadd.f32 1.0, %v457_v52  ;;  %vm461_vm2 = vcmp.lt.f32.partialorder %v460_v12, 0.0004427343 }
 0x253   :  { %v667_v41 = vpop.eup %666  ;;  %v438_v44 = vmul.f32 0.6931472, %v665_v37  ;;  %v468_v24 = vmul.f32 %v661_v28, %v467_v1 }
 0x254   :  { %v862_v46 = vpop.eup %668  ;;  %v447_v47 = vmul.f32 0.6931472, %v667_v41  ;;  %v459_v30 = vmul.f32 %v846_v29, %v458_v10 }
 0x255   :  { %v864_v50 = vpop.eup %670  ;;  %v444_v51 = vsel %vm443_vm12, %v441_v45, %v438_v44  ;;  %v481_v55 = vadd.f32 1.0, %v862_v46  ;;  %v484_v13 = vmul.f32 -0.5, %v862_v46  ;;  %v487_v28 = vand.u32 2147483647, %v862_v46 }
 0x256   :  { %v453_v56 = vsel %vm452_vm13, %v450_v48, %v447_v47  ;;  %v490_v53 = vsub.f32 %v406_v43, %v444_v51  ;;  %v472_v54 = vadd.f32 1.0, %v864_v50  ;;  %v475_v19 = vmul.f32 -0.5, %v864_v50 }
 0x257   :  { %v491_v57 = vsub.f32 %v407_v42, %v453_v56  ;;  %676 = vlog2.f32 %v481_v55  ;;  %v485_v33 = vadd.f32 1.0, %v484_v13  ;;  %v478_v37 = vand.u32 2147483647, %v864_v50 }
 0x258   :  { %v496_v60 = vsel %vm855_vm11, %v490_v53, 0.0  ;;  %678 = vlog2.f32 %v472_v54  ;;  %v476_v36 = vadd.f32 1.0, %v475_v19  ;;  %vm488_vm4 = vcmp.lt.f32.partialorder %v487_v28, 0.0004427343 }
 0x259   :  { %v497_v4 = vsel %vm850_vm10, %v491_v57, 0.0  ;;  %v503_v7 = vsel %vm502_vm14, %v496_v60, 0.0  ;;  %v486_v41 = vmul.f32 %v862_v46, %v485_v33  ;;  %v410_v44 = vmin.f32 %v398_v8, 0.0 }
 0x25a   :  { %v504_v11 = vsel %vm502_vm14, %v497_v4, 0.0  ;;  %v477_v5 = vmul.f32 %v864_v50, %v476_v36  ;;  %vm479_vm5 = vcmp.lt.f32.partialorder %v478_v37, 0.0004427343 }
 0x25b   :  { %v673_v14 = vpop.eup %672  ;;  %v505_v16 = vadd.f32 %v504_v11, %v503_v7 }
 0x25c   :  { %v675_v20 = vpop.eup %674  ;;  %v465_v21 = vmul.f32 0.6931472, %v673_v14 }
 0x25d   :  { %v456_v22 = vmul.f32 0.6931472, %v675_v20 }
 0x25e   :  { %v471_v31 = vsel %vm470_vm1, %v468_v24, %v465_v21 }
 0x25f   :  { %v493_v34 = vsub.f32 %v409_v27, %v471_v31  ;;  %v462_v35 = vsel %vm461_vm2, %v459_v30, %v456_v22 }
 0x260   :  { %v492_v15 = vsub.f32 %v408_v32, %v462_v35 }
 0x261   :  { %v677_v61 = vpop.eup %676  ;;  %v499_v0 = vsel %vm879_vm15, %v493_v34, 0.0 }
 0x262   :  { %v679_v63 = vpop.eup %678  ;;  %v498_v39 = vsel %vm884_vm0, %v492_v15, 0.0  ;;  %v483_v40 = vmul.f32 0.6931472, %v677_v61  ;;  %v508_v49 = vsel %vm502_vm14, %v499_v0, 0.0 }
 0x263   :  { %v506_v42 = vsel %vm502_vm14, %v498_v39, 0.0  ;;  %v474_v3 = vmul.f32 0.6931472, %v679_v63 }
 0x264   :  { %v489_v43 = vsel %vm488_vm4, %v486_v41, %v483_v40  ;;  %v507_v45 = vadd.f32 %v506_v42, %v505_v16 }
 0x265   :  { %v495_v47 = vsub.f32 %v411_v62, %v489_v43  ;;  %v480_v48 = vsel %vm479_vm5, %v477_v5, %v474_v3 }
 0x266   :  { %v494_v51 = vsub.f32 %v410_v44, %v480_v48  ;;  %v509_v46 = vadd.f32 %v508_v49, %v507_v45 }
 0x267   :  { %v501_v55 = vsel %vm900_vm3, %v495_v47, 0.0 }
 0x268   :  { %v500_v52 = vsel %vm386_vm6, %v494_v51, 0.0  ;;  %v512_v6 = vsel %vm502_vm14, %v501_v55, 0.0 }
 0x269   :  { %v510_v50 = vsel %vm502_vm14, %v500_v52, 0.0 }
 0x26a   :  { %v511_v56 = vadd.f32 %v510_v50, %v509_v46 }
 0x26c   :  { %v513_v8 = vadd.f32 %v512_v6, %v511_v56 }
 0x26e   :  { %514 = vadd.xlane.f32.xlu1 %v513_v8 }
 0x2fb   :  { %v515_v53 = vpop.xlane.xlu1 %514 }
 0x2fc   :  { %v516_v54 = vrot.slane %v515_v53, 4 }
 0x2fe   :  { %v517_v57 = vadd.f32 %v516_v54, %v515_v53 }
 0x300   :  { %v518_v58 = vrot.slane %v517_v57, 2 }
 0x302   :  { %v519_v23 = vadd.f32 %v518_v58, %v517_v57 }
 0x304   :  { %v520_v59 = vrot.slane %v519_v23, 1 }
 0x306   :  { %v521_v60 = vadd.f32 %v520_v59, %v519_v23 }
 0x308   :  { %647 = vpush %v521_v60 }
 0x339   :  { %s648_s0 = spop %647 }
 0x33a   :  { %v523_v1 = vstv %s648_s0 }
 0x33b   :  { %v524_v2 = vsub.f32 0.0, %v523_v1 }
 0x33d   :  { %v526_v4 = vmul.f32 0.125, %v524_v2 }
 0x33f   :  { %528 = vst.msk [vmem:[#allocation2] sm:$0x1] %vm527_vm7, %v526_v4 }
 0x340   :  { %691 = shalt.err (!%p688_p4)
}
 0x341   :  { %s692_s16 = scalar_lea.hbm %s933_s2, 16 }
 0x342   :  { %p693_p5 = scmp.ne.s32.totalorder %s933_s2, %s692_s16  ;;  %p696_p6 = scmp.lt.u32.totalorder %s692_s16, %s933_s2 }
 0x344   :  { %p698_p7 = pnand %p696_p6, %p693_p5 }
 0x346   :  { %701 = shalt.err (!%p698_p7)
}
 0x347   :  { %538 = dma.vmem_to_hbm [thread:$0]  %s536_s11, 16, %s933_s2, [#allocation3]  }
 0x348   :  { %702 = dma.done.wait [#allocation3], 16  }
 0x349   :  { %703 = vsyncadd [#allocation3], 4294967280 }
 0x34a   :  { %542 = vsyncpa [#allocation3], 1 }

</bundles_post_ra>
